<compile_context>
chip_gen: v6e
topology: v6e:2x2x1
jax: 0.10.0
libtpu: 0.0.40
codegen_flags: <defaults>
</compile_context>

<pallas_src>
import functools

import jax
import jax.numpy as jnp
from jax import lax
from jax.experimental import pallas as pl
from jax.experimental.pallas import tpu as pltpu


# ----------------------------------------------------------------------------
# helpers
# ----------------------------------------------------------------------------
def _fold_bn(bn, eps):
    """BatchNorm (eval) -> per-channel scale/bias: y = x*s + b."""
    s = bn["gamma"] / jnp.sqrt(bn["var"] + eps)
    b = bn["beta"] - bn["mean"] * s
    return s.astype(jnp.float32), b.astype(jnp.float32)


def _pick_tile(p, max_lane, bytes_per=2):
    """Largest spatial row-tile dividing P whose per-step buffers stay small."""
    budget = 8 << 20  # ~8 MiB of per-step activation buffers (double-buffered)
    for t in (4096, 2048, 1024, 512, 256, 128):
        if p % t == 0 and t * max_lane * bytes_per * 6 <= budget:
            return t
    for t in (4096, 2048, 1024, 512, 256, 128, 64, 32, 16, 8):
        if p % t == 0:
            return t
    return p


# ----------------------------------------------------------------------------
# Kernel A: fused cv1 (1x1 conv + BN + SiLU) and cv2 (plain 1x1 conv),
# single matmul against the concatenated (C1, 2*c_) weight.
# ----------------------------------------------------------------------------
def _pre_kernel(x_ref, w_ref, s1_ref, b1_ref, y1_ref, y2_ref, *, Cm):
    x = x_ref[0]                                                      # (TM, C1)
    y = jnp.dot(x, w_ref[...], preferred_element_type=jnp.float32)   # (TM, 2c_)
    y1 = y[:, :Cm] * s1_ref[...] + b1_ref[...]
    y1 = y1 * jax.nn.sigmoid(y1)                                      # SiLU
    y1_ref[0] = y1.astype(y1_ref.dtype)
    y2_ref[0] = y[:, Cm:].astype(y2_ref.dtype)


# ----------------------------------------------------------------------------
# Kernel B: ALL n Bottleneck blocks fused.  Each 3x3 conv+BN+SiLU is a single
# wide-K matmul against an im2col tile built in VMEM from 9 shifted reads of a
# zero-band-padded plane (vertical boundary -> zero bands, horizontal -> two
# cheap bf16 masks on the im2col copies).
# ----------------------------------------------------------------------------
def _csp_blocks_kernel(x_ref, w_ref, s_ref, b_ref, o_ref, pad_ref, col_ref,
                       *, W, P, Cm, n, shortcut):
    PADR = W + 1
    cdt = pad_ref.dtype

    # zero top/bottom halo bands (small; once per grid step)
    zband = jnp.zeros((PADR, Cm), cdt)
    pad_ref[pl.ds(0, PADR), :] = zband
    pad_ref[pl.ds(PADR + P, PADR), :] = zband

    # horizontal-boundary masks (vertical boundary handled by the zero bands)
    col_idx = lax.broadcasted_iota(jnp.int32, (P, 1), 0) % W
    mask_l = col_idx >= 1            # x-1 valid
    mask_r = col_idx <= (W - 2)      # x+1 valid

    def conv3x3_bn_silu(widx):
        # build im2col (P, 9*Cm) from 9 contiguous shifted reads
        k = 0
        for dy in (-1, 0, 1):
            for dx in (-1, 0, 1):
                xs = pad_ref[pl.ds(PADR + dy * W + dx, P), :]         # (P, Cm)
                if dx == -1:
                    xs = jnp.where(mask_l, xs, jnp.zeros_like(xs))
                elif dx == 1:
                    xs = jnp.where(mask_r, xs, jnp.zeros_like(xs))
                col_ref[:, k * Cm:(k + 1) * Cm] = xs
                k += 1
        # one wide-K matmul on the MXU, f32 accumulation
        y = jnp.dot(col_ref[...], w_ref[widx],
                    preferred_element_type=jnp.float32)               # (P, Cm)
        y = y * s_ref[widx] + b_ref[widx]
        return y * jax.nn.sigmoid(y)                                  # SiLU

    cur = x_ref[0].astype(jnp.float32)            # running activation (f32)
    pad_ref[pl.ds(PADR, P), :] = x_ref[0]         # interior = block input
    for j in range(n):
        h = conv3x3_bn_silu(2 * j)                                    # 3x3 #1
        pad_ref[pl.ds(PADR, P), :] = h.astype(cdt)
        h = conv3x3_bn_silu(2 * j + 1)                                # 3x3 #2
        cur = cur + h if shortcut else h
        if j + 1 < n:
            pad_ref[pl.ds(PADR, P), :] = cur.astype(cdt)
    o_ref[0] = cur.astype(o_ref.dtype)


# ----------------------------------------------------------------------------
# Kernel C: fused cv3 (1x1) -> BN(cat)+SiLU -> cv4 (single K=2c_ matmul) + BN + SiLU
# ----------------------------------------------------------------------------
def _post_kernel(y1_ref, y2_ref, w3_ref, sca_ref, bca_ref, scb_ref, bcb_ref,
                 w4_ref, s4_ref, b4_ref, o_ref):
    cdt = w4_ref.dtype
    # cv3 on the bottleneck branch + BN(cat) first half + SiLU
    t = jnp.dot(y1_ref[0], w3_ref[...], preferred_element_type=jnp.float32)
    z1 = t * sca_ref[...] + bca_ref[...]
    z1 = z1 * jax.nn.sigmoid(z1)
    # cv2 branch: BN(cat) second half + SiLU
    y2 = y2_ref[0].astype(jnp.float32)
    z2 = y2 * scb_ref[...] + bcb_ref[...]
    z2 = z2 * jax.nn.sigmoid(z2)
    # cv4 = single 1x1 conv over the lane-concatenated branches (K = 2*c_)
    z = jnp.concatenate([z1.astype(cdt), z2.astype(cdt)], axis=-1)
    o = jnp.dot(z, w4_ref[...], preferred_element_type=jnp.float32)
    o = o * s4_ref[...] + b4_ref[...]
    o = o * jax.nn.sigmoid(o)
    o_ref[0] = o.astype(o_ref.dtype)


# ----------------------------------------------------------------------------
# Wrapper
# ----------------------------------------------------------------------------
def bottleneck_csp_forward(x, params, *, shortcut=True,
                           compute_dtype=jnp.bfloat16, eps=1e-5):
    """x: (N, C1, H, W) float32.  Returns (N, C2, H, W) float32."""
    N, C1, H, W = x.shape
    c_ = params["cv1_w"].shape[0]
    c2 = params["cv4_w"].shape[0]
    n = len(params["m"])
    P = H * W
    cdt = compute_dtype
    itemsize = jnp.dtype(cdt).itemsize

    # pixel-major activations (N, H*W, C); cast BEFORE transposing (bf16 traffic)
    x_pm = jnp.transpose(x.astype(cdt), (0, 2, 3, 1)).reshape(N, P, C1)

    TM = _pick_tile(P, max(C1, 2 * c_, c2), itemsize)
    gm = P // TM

    # ---- Kernel A: cv1 + cv2 (one matmul against concatenated weights) ------
    w1 = params["cv1_w"][:, :, 0, 0].T                               # (C1, c_)
    w2 = params["cv2_w"][:, :, 0, 0].T                               # (C1, c_)
    w12 = jnp.concatenate([w1, w2], axis=1).astype(cdt)              # (C1, 2c_)
    s1, b1 = _fold_bn(params["cv1_bn"], eps)

    y1, y2 = pl.pallas_call(
        functools.partial(_pre_kernel, Cm=c_),
        out_shape=(jax.ShapeDtypeStruct((N, P, c_), cdt),
                   jax.ShapeDtypeStruct((N, P, c_), cdt)),
        grid=(N, gm),
        in_specs=[
            pl.BlockSpec((1, TM, C1), lambda i, j: (i, j, 0)),
            pl.BlockSpec((C1, 2 * c_), lambda i, j: (0, 0)),
            pl.BlockSpec((1, c_), lambda i, j: (0, 0)),
            pl.BlockSpec((1, c_), lambda i, j: (0, 0)),
        ],
        out_specs=(pl.BlockSpec((1, TM, c_), lambda i, j: (i, j, 0)),
                   pl.BlockSpec((1, TM, c_), lambda i, j: (i, j, 0))),
        compiler_params=pltpu.CompilerParams(
            dimension_semantics=("parallel", "parallel")),
    )(x_pm, w12, s1.reshape(1, c_), b1.reshape(1, c_))

    # ---- Kernel B: all n Bottleneck blocks fused -----------------------------
    ws, ss, bs = [], [], []
    for blk in params["m"]:
        # OIHW -> (ky, kx, cin, cout) -> (9*c_, c_), matching im2col slot order
        ws.append(blk["cv1_w"].transpose(2, 3, 1, 0).reshape(9 * c_, c_))
        ws.append(blk["cv2_w"].transpose(2, 3, 1, 0).reshape(9 * c_, c_))
        sa, ba = _fold_bn(blk["cv1_bn"], eps)
        sb, bb = _fold_bn(blk["cv2_bn"], eps)
        ss += [sa, sb]
        bs += [ba, bb]
    w_all = jnp.stack(ws).astype(cdt)                 # (2n, 9c_, c_)
    s_all = jnp.stack(ss)[:, None, :]                 # (2n, 1, c_) f32
    b_all = jnp.stack(bs)[:, None, :]                 # (2n, 1, c_) f32

    PADR = W + 1
    kernel_b = functools.partial(_csp_blocks_kernel, W=W, P=P, Cm=c_, n=n,
                                 shortcut=shortcut)
    h = pl.pallas_call(
        kernel_b,
        out_shape=jax.ShapeDtypeStruct((N, P, c_), cdt),
        grid=(N,),
        in_specs=[
            pl.BlockSpec((1, P, c_), lambda i: (i, 0, 0)),
            pl.BlockSpec((2 * n, 9 * c_, c_), lambda i: (0, 0, 0)),
            pl.BlockSpec((2 * n, 1, c_), lambda i: (0, 0, 0)),
            pl.BlockSpec((2 * n, 1, c_), lambda i: (0, 0, 0)),
        ],
        out_specs=pl.BlockSpec((1, P, c_), lambda i: (i, 0, 0)),
        scratch_shapes=[
            pltpu.VMEM((P + 2 * PADR, c_), cdt),      # zero-band-padded plane
            pltpu.VMEM((P, 9 * c_), cdt),             # im2col tile
        ],
        compiler_params=pltpu.CompilerParams(
            dimension_semantics=("parallel",),
            # explicit budget; v7x has 64 MiB physical VMEM — very large
            # feature maps need the spatial-halo-tiling TODO above.
            vmem_limit_bytes=96 * 1024 * 1024),
    )(y1, w_all, s_all, b_all)

    # ---- Kernel C: cv3 + BN(cat) + SiLU + cv4 --------------------------------
    w3 = params["cv3_w"][:, :, 0, 0].T.astype(cdt)                   # (c_, c_)
    w4 = params["cv4_w"][:, :, 0, 0].T.astype(cdt)                   # (2c_, c2)
    sc, bc = _fold_bn(params["bn_cat"], eps)                         # (2c_,)
    s4, b4 = _fold_bn(params["cv4_bn"], eps)                         # (c2,)

    out_pm = pl.pallas_call(
        _post_kernel,
        out_shape=jax.ShapeDtypeStruct((N, P, c2), cdt),             # lane-dense, compute dtype
        grid=(N, gm),
        in_specs=[
            pl.BlockSpec((1, TM, c_), lambda i, j: (i, j, 0)),
            pl.BlockSpec((1, TM, c_), lambda i, j: (i, j, 0)),
            pl.BlockSpec((c_, c_), lambda i, j: (0, 0)),
            pl.BlockSpec((1, c_), lambda i, j: (0, 0)),
            pl.BlockSpec((1, c_), lambda i, j: (0, 0)),
            pl.BlockSpec((1, c_), lambda i, j: (0, 0)),
            pl.BlockSpec((1, c_), lambda i, j: (0, 0)),
            pl.BlockSpec((2 * c_, c2), lambda i, j: (0, 0)),
            pl.BlockSpec((1, c2), lambda i, j: (0, 0)),
            pl.BlockSpec((1, c2), lambda i, j: (0, 0)),
        ],
        out_specs=pl.BlockSpec((1, TM, c2), lambda i, j: (i, j, 0)),
        compiler_params=pltpu.CompilerParams(
            dimension_semantics=("parallel", "parallel")),
    )(h, y2, w3,
      sc[:c_].reshape(1, c_), bc[:c_].reshape(1, c_),
      sc[c_:].reshape(1, c_), bc[c_:].reshape(1, c_),
      w4, s4.reshape(1, c2), b4.reshape(1, c2))

    # back to NCHW; transpose in compute dtype, upcast at the end (XLA fuses)
    out = out_pm.reshape(N, H, W, c2).transpose(0, 3, 1, 2)
    return out.astype(jnp.float32)


# ----------------------------------------------------------------------------
# Pure-JAX reference (module semantics, f32) for correctness checking.
# ----------------------------------------------------------------------------
def _bn_eval(x, bn, eps=1e-5):
    g = bn["gamma"][None, :, None, None]
    b = bn["beta"][None, :, None, None]
    m = bn["mean"][None, :, None, None]
    v = bn["var"][None, :, None, None]
    return (x - m) / jnp.sqrt(v + eps) * g + b


def _conv(x, w, pad):
    return lax.conv_general_dilated(
        x, w, window_strides=(1, 1), padding=[(pad, pad), (pad, pad)],
        dimension_numbers=("NCHW", "OIHW", "NCHW"),
        precision=lax.Precision.HIGHEST)


def reference_forward(x, params, *, shortcut=True, eps=1e-5):
    silu = jax.nn.silu
    y = silu(_bn_eval(_conv(x, params["cv1_w"], 0), params["cv1_bn"], eps))
    for blk in params["m"]:
        h = silu(_bn_eval(_conv(y, blk["cv1_w"], 1), blk["cv1_bn"], eps))
        h = silu(_bn_eval(_conv(h, blk["cv2_w"], 1), blk["cv2_bn"], eps))
        y = y + h if shortcut else h
    y1 = _conv(y, params["cv3_w"], 0)
    y2 = _conv(x, params["cv2_w"], 0)
    z = jnp.concatenate([y1, y2], axis=1)
    z = silu(_bn_eval(z, params["bn_cat"], eps))
    return silu(_bn_eval(_conv(z, params["cv4_w"], 0), params["cv4_bn"], eps))


# ----------------------------------------------------------------------------
# Self-test
# ----------------------------------------------------------------------------
if __name__ == "__main__":
    key = jax.random.PRNGKey(0)
    N, c1, c2, H, W = 2, 32, 32, 16, 16
    n_blocks, e, shortcut = 2, 0.5, True
    c_ = int(c2 * e)

    keys = iter(jax.random.split(key, 64))

    def w_init(k, shape):
        fan_in = shape[1] * shape[2] * shape[3]
        return jax.random.normal(k, shape, jnp.float32) / jnp.sqrt(float(fan_in))

    def bn_init(k, c):
        k1, k2, k3, k4 = jax.random.split(k, 4)
        return dict(gamma=1.0 + 0.1 * jax.random.normal(k1, (c,), jnp.float32),
                    beta=0.1 * jax.random.normal(k2, (c,), jnp.float32),
                    mean=0.1 * jax.random.normal(k3, (c,), jnp.float32),
                    var=0.5 + jax.random.uniform(k4, (c,), jnp.float32))

    params = dict(
        cv1_w=w_init(next(keys), (c_, c1, 1, 1)), cv1_bn=bn_init(next(keys), c_),
        cv2_w=w_init(next(keys), (c_, c1, 1, 1)),
        cv3_w=w_init(next(keys), (c_, c_, 1, 1)),
        cv4_w=w_init(next(keys), (c2, 2 * c_, 1, 1)),
        cv4_bn=bn_init(next(keys), c2),
        bn_cat=bn_init(next(keys), 2 * c_),
        m=[dict(cv1_w=w_init(next(keys), (c_, c_, 3, 3)),
                cv1_bn=bn_init(next(keys), c_),
                cv2_w=w_init(next(keys), (c_, c_, 3, 3)),
                cv2_bn=bn_init(next(keys), c_))
           for _ in range(n_blocks)])

    x = jax.random.normal(next(keys), (N, c1, H, W), jnp.float32)

    ref = reference_forward(x, params, shortcut=shortcut)

    # strict correctness check with f32 matmuls
    out_f32 = jax.block_until_ready(
        bottleneck_csp_forward(x, params, shortcut=shortcut,
                               compute_dtype=jnp.float32))
    assert out_f32.shape == (N, c2, H, W)
    err = float(jnp.max(jnp.abs(out_f32 - ref)))
    assert err < 2e-2, f"f32 mismatch: {err}"

    # default bf16 (performance) mode — looser tolerance for bf16 matmul inputs
    out_bf16 = jax.block_until_ready(
        bottleneck_csp_forward(x, params, shortcut=shortcut,
                               compute_dtype=jnp.bfloat16))
    err_bf = float(jnp.max(jnp.abs(out_bf16.astype(jnp.float32) - ref)))
    assert err_bf < 0.25, f"bf16 mismatch: {err_bf}"

    print("KERNEL_OK")
</pallas_src>

<mosaic_0001>
module attributes {stable_mosaic.version = 11 : i64} {
  func.func @_pre_kernel(%arg0: i32, %arg1: i32, %arg2: memref<1x256x32xf32, #tpu.memory_space<vmem>>, %arg3: memref<32x32xf32, #tpu.memory_space<vmem>>, %arg4: memref<1x16xf32, #tpu.memory_space<vmem>>, %arg5: memref<1x16xf32, #tpu.memory_space<vmem>>, %arg6: memref<1x256x16xf32, #tpu.memory_space<vmem>>, %arg7: memref<1x256x16xf32, #tpu.memory_space<vmem>>) attributes {dimension_semantics = [#tpu.dimension_semantics<parallel>, #tpu.dimension_semantics<parallel>], iteration_bounds = array<i64: 2, 1>, scalar_prefetch = 0 : i64, scratch_operands = 0 : i64, tpu.core_type = #tpu.core_type<tc>, window_params = [{transform_indices = @transform_0, window_bounds = array<i64: 1, 256, 32>}, {pipeline_mode = #tpu.pipeline_mode<synchronous>, transform_indices = @transform_1, window_bounds = array<i64: 32, 32>}, {pipeline_mode = #tpu.pipeline_mode<synchronous>, transform_indices = @transform_2, window_bounds = array<i64: 1, 16>}, {pipeline_mode = #tpu.pipeline_mode<synchronous>, transform_indices = @transform_3, window_bounds = array<i64: 1, 16>}, {transform_indices = @transform_4, window_bounds = array<i64: 1, 256, 16>}, {transform_indices = @transform_5, window_bounds = array<i64: 1, 256, 16>}]} {
    %c0 = arith.constant 0 : index
    %c0_0 = arith.constant 0 : index
    %c0_1 = arith.constant 0 : index
    %0 = vector.load %arg2[%c0, %c0_0, %c0_1] : memref<1x256x32xf32, #tpu.memory_space<vmem>>, vector<1x256x32xf32>
    %1 = vector.shape_cast %0 : vector<1x256x32xf32> to vector<256x32xf32>
    %c0_2 = arith.constant 0 : index
    %c0_3 = arith.constant 0 : index
    %2 = vector.load %arg3[%c0_2, %c0_3] : memref<32x32xf32, #tpu.memory_space<vmem>>, vector<32x32xf32>
    %cst = arith.constant dense<0.000000e+00> : vector<256x32xf32>
    %3 = tpu.matmul %1, %2, %cst {dimension_numbers = #tpu.dot_dimension_numbers<[1], [0], [0], [1], [0, 0, 1, 1], [], []>} : vector<256x32xf32>, vector<32x32xf32>, vector<256x32xf32> -> vector<256x32xf32>
    %4 = vector.extract_strided_slice %3 {offsets = [0, 0], sizes = [256, 16], strides = [1, 1]} : vector<256x32xf32> to vector<256x16xf32>
    %c0_4 = arith.constant 0 : index
    %c0_5 = arith.constant 0 : index
    %5 = vector.load %arg4[%c0_4, %c0_5] : memref<1x16xf32, #tpu.memory_space<vmem>>, vector<1x16xf32>
    %6 = vector.broadcast %5 : vector<1x16xf32> to vector<256x16xf32>
    %7 = arith.mulf %4, %6 : vector<256x16xf32>
    %c0_6 = arith.constant 0 : index
    %c0_7 = arith.constant 0 : index
    %8 = vector.load %arg5[%c0_6, %c0_7] : memref<1x16xf32, #tpu.memory_space<vmem>>, vector<1x16xf32>
    %9 = vector.broadcast %8 : vector<1x16xf32> to vector<256x16xf32>
    %10 = arith.addf %7, %9 : vector<256x16xf32>
    %11 = arith.negf %10 : vector<256x16xf32>
    %12 = math.exp %11 : vector<256x16xf32>
    %cst_8 = arith.constant 1.000000e+00 : f32
    %13 = vector.broadcast %cst_8 : f32 to vector<256x16xf32>
    %14 = arith.addf %13, %12 : vector<256x16xf32>
    %15 = arith.divf %13, %14 : vector<256x16xf32>
    %16 = arith.mulf %10, %15 : vector<256x16xf32>
    %c0_9 = arith.constant 0 : index
    %c0_10 = arith.constant 0 : index
    %c0_11 = arith.constant 0 : index
    %17 = vector.load %arg6[%c0_9, %c0_10, %c0_11] : memref<1x256x16xf32, #tpu.memory_space<vmem>>, vector<1x256x16xf32>
    %18 = vector.shape_cast %17 : vector<1x256x16xf32> to vector<256x16xf32>
    %19 = vector.shape_cast %16 : vector<256x16xf32> to vector<1x256x16xf32>
    tpu.vector_store %arg6[%c0_9, %c0_10, %c0_11], %19 {strides = array<i32>} : memref<1x256x16xf32, #tpu.memory_space<vmem>>, vector<1x256x16xf32>,
    %20 = vector.extract_strided_slice %3 {offsets = [0, 16], sizes = [256, 16], strides = [1, 1]} : vector<256x32xf32> to vector<256x16xf32>
    %c0_12 = arith.constant 0 : index
    %c0_13 = arith.constant 0 : index
    %c0_14 = arith.constant 0 : index
    %21 = vector.load %arg7[%c0_12, %c0_13, %c0_14] : memref<1x256x16xf32, #tpu.memory_space<vmem>>, vector<1x256x16xf32>
    %22 = vector.shape_cast %21 : vector<1x256x16xf32> to vector<256x16xf32>
    %23 = vector.shape_cast %20 : vector<256x16xf32> to vector<1x256x16xf32>
    tpu.vector_store %arg7[%c0_12, %c0_13, %c0_14], %23 {strides = array<i32>} : memref<1x256x16xf32, #tpu.memory_space<vmem>>, vector<1x256x16xf32>,
    return
  }
  func.func @transform_0(%arg0: i32, %arg1: i32) -> (i32, i32, i32) {
    %c0_i32 = arith.constant 0 : i32
    %c0_i32_0 = arith.constant 0 : i32
    return %arg0, %arg1, %c0_i32 : i32, i32, i32
  }
  func.func @transform_1(%arg0: i32, %arg1: i32) -> (i32, i32) {
    %c0_i32 = arith.constant 0 : i32
    %c0_i32_0 = arith.constant 0 : i32
    %c0_i32_1 = arith.constant 0 : i32
    return %c0_i32, %c0_i32_0 : i32, i32
  }
  func.func @transform_2(%arg0: i32, %arg1: i32) -> (i32, i32) {
    %c0_i32 = arith.constant 0 : i32
    %c0_i32_0 = arith.constant 0 : i32
    %c0_i32_1 = arith.constant 0 : i32
    return %c0_i32, %c0_i32_0 : i32, i32
  }
  func.func @transform_3(%arg0: i32, %arg1: i32) -> (i32, i32) {
    %c0_i32 = arith.constant 0 : i32
    %c0_i32_0 = arith.constant 0 : i32
    %c0_i32_1 = arith.constant 0 : i32
    return %c0_i32, %c0_i32_0 : i32, i32
  }
  func.func @transform_4(%arg0: i32, %arg1: i32) -> (i32, i32, i32) {
    %c0_i32 = arith.constant 0 : i32
    %c0_i32_0 = arith.constant 0 : i32
    return %arg0, %arg1, %c0_i32 : i32, i32, i32
  }
  func.func @transform_5(%arg0: i32, %arg1: i32) -> (i32, i32, i32) {
    %c0_i32 = arith.constant 0 : i32
    %c0_i32_0 = arith.constant 0 : i32
    return %arg0, %arg1, %c0_i32 : i32, i32, i32
  }
}

</mosaic_0001>

<bundles_post_ra>
// kernel: tpu_custom_call.1
= control target key start
LH: loop header
LB: loop body
LE: loop exit
PB: predicated region body
PF: predicated region fallthrough
CT: control target
= control target key end

     0   :  { %s1668_s18 = smov 0   ;;  %s1670_s19 = smov 0   ;;  %s2225_s0 = inlined_call_operand.vmem [shape: f32[2,256,32], index: 0, kind: input, shape index: {}]   ;;  %s2226_s1 = inlined_call_operand.vmem [shape: f32[32,32], index: 1, kind: input, shape index: {}]   ;;  %s2227_s2 = inlined_call_operand.vmem [shape: f32[1,16], index: 2, kind: input, shape index: {}]   ;;  %s2228_s3 = inlined_call_operand.vmem [shape: f32[1,16], index: 3, kind: input, shape index: {}]   ;;  %s2229_s4 = inlined_call_operand.vmem [shape: f32[2,256,16], index: 4, kind: output, shape index: {0}]   ;;  %s2230_s5 = inlined_call_operand.vmem [shape: f32[2,256,16], index: 5, kind: output, shape index: {1}]  }
   0x1   :  { %s1672_s20 = smov 0  }
   0x2 LB: > { %s28_s21 = sadd.s32 1, %s1631_s19  ;;  %p1282_p0 = scmp.ge.s32.totalorder %s1635_s20, 1  ;;  %s1635_s20 = sphi %s1672_s20, %s16_s20   ;;  %s1631_s19 = sphi %s1670_s19, %s2232_s19   ;;  %s1627_s18 = sphi %s1668_s18, %s2231_s18  }
   0x3   : > { %p30_p1 = scmp.ge.s32.totalorder %s28_s21, 2  ;;  %p213_p2 = scmp.lt.s32.totalorder %s1635_s20, 3 }
   0x5   : > { %s2234_s21 = smov (%p30_p1, %s28_s21), 0  ;;  %p214_p3 = pnand %p1282_p0, %p213_p2 }
   0x6   : > { %p259_p4 = scmp.lt.s32.totalorder (!%p214_p3), %s1627_s18, 1  ;;  %s1637_s13 = smov (!%p214_p3), 112  }
   0x7   : > { %217 = sbr.rel (%p214_p3) target bundleno = 391 (0x187), region = 36 }
   0xc   : > { %v323_v0 = vld [vmem:[%s2226_s1 + $0x18] sm:$0xff]  ;;  %v322_v1 = vld [vmem:[%s2226_s1 + $0x10] sm:$0xff]  ;;  %v321_v2 = vld [vmem:[%s2226_s1 + $0x8] sm:$0xff]  ;;  %s2236_s18 = smov (!%p259_p4, %s1627_s18), 1  ;;  %vm324_vm0 = vcmask 261120   ;;  %vm948_vm1 = vcmask 130048  }
   0xd   : > { %1396 = vmatprep.subr.mxu0 %v323_v0  ;;  %1452 = vmatprep.subr.mxu1 %v323_v0  ;;  %v320_v3 = vld [vmem:[%s2226_s1] sm:$0xff]  ;;  %s1698_s30 = sshll.u32 %s2236_s18, 8 }
   0xe   : > { %1397 = vmatpush3.msra.mxu0 %v323_v0  ;;  %1456 = vmatpush3.msra.mxu1 %v323_v0  ;;  %s1704_s8 = scalar_lea.vmem %s2225_s0, %s1698_s30  ;;  %v1773_v36 = vld [vmem:[%s2227_s2] ss:$0 sm:$0xff]  ;;  %s1959_s16 = scalar_lea.vmem %s2229_s4, %s1698_s30 }
   0xf   : > { %1398 = vmatprep.subr.mxu0 %v322_v1  ;;  %1453 = vmatprep.subr.mxu1 %v322_v1  ;;  %v288_v4 = vld [vmem:[%s1704_s8] sm:$0xff]  ;;  %v289_v6 = vld [vmem:[%s1704_s8 + $0x8] sm:$0xff]  ;;  %v290_v8 = vld [vmem:[%s1704_s8 + $0x10] sm:$0xff]  ;;  %s2150_s22 = scalar_lea.vmem %s2230_s5, %s1698_s30 }
  0x10   : > { %1399 = vmatpush3.msra.mxu0 %v322_v1  ;;  %1457 = vmatpush3.msra.mxu1 %v322_v1  ;;  %v304_v5 = vld [vmem:[%s1704_s8 + $0x80] sm:$0xff]  ;;  %v305_v7 = vld [vmem:[%s1704_s8 + $0x88] sm:$0xff]  ;;  %v306_v9 = vld [vmem:[%s1704_s8 + $0x90] sm:$0xff] }
  0x11   : > { %1400 = vmatprep.subr.mxu0 %v321_v2  ;;  %1454 = vmatprep.subr.mxu1 %v321_v2  ;;  %v291_v10 = vld [vmem:[%s1704_s8 + $0x18] sm:$0xff]  ;;  %v292_v12 = vld [vmem:[%s1704_s8 + $0x20] sm:$0xff]  ;;  %v293_v14 = vld [vmem:[%s1704_s8 + $0x28] sm:$0xff] }
  0x12   : > { %1401 = vmatpush3.msra.mxu0 %v321_v2  ;;  %1458 = vmatpush3.msra.mxu1 %v321_v2  ;;  %v307_v11 = vld [vmem:[%s1704_s8 + $0x98] sm:$0xff]  ;;  %v308_v13 = vld [vmem:[%s1704_s8 + $0xa0] sm:$0xff]  ;;  %v309_v15 = vld [vmem:[%s1704_s8 + $0xa8] sm:$0xff] }
  0x13   : > { %1402 = vmatprep.subr.mxu0 %v320_v3  ;;  %1455 = vmatprep.subr.mxu1 %v320_v3  ;;  %v294_v16 = vld [vmem:[%s1704_s8 + $0x30] sm:$0xff]  ;;  %v295_v18 = vld [vmem:[%s1704_s8 + $0x38] sm:$0xff]  ;;  %v296_v20 = vld [vmem:[%s1704_s8 + $0x40] sm:$0xff] }
  0x14   : > { %1403 = vmatpush3.msra.mxu0 %v320_v3  ;;  %1459 = vmatpush3.msra.mxu1 %v320_v3  ;;  %v310_v17 = vld [vmem:[%s1704_s8 + $0xb0] sm:$0xff]  ;;  %v311_v19 = vld [vmem:[%s1704_s8 + $0xb8] sm:$0xff]  ;;  %v312_v21 = vld [vmem:[%s1704_s8 + $0xc0] sm:$0xff] }
  0x15   : > { %1404 = vmatprep.mubr.msk.f32.mxu0 %vm324_vm0, %v288_v4  ;;  %1428 = vmatprep.mubr.msk.f32.mxu1 %vm324_vm0, %v304_v5  ;;  %v297_v22 = vld [vmem:[%s1704_s8 + $0x48] sm:$0xff]  ;;  %v298_v24 = vld [vmem:[%s1704_s8 + $0x50] sm:$0xff]  ;;  %v299_v26 = vld [vmem:[%s1704_s8 + $0x58] sm:$0xff] }
  0x16   : > { %1405 = vmatmul.mubr.msk.f32.vlgmr.msra.gmra.mxu0 %vm324_vm0, %v289_v6  ;;  %1429 = vmatmul.mubr.msk.f32.vlgmr.msra.gmra.mxu1 %vm324_vm0, %v305_v7  ;;  %v313_v23 = vld [vmem:[%s1704_s8 + $0xc8] sm:$0xff]  ;;  %v314_v25 = vld [vmem:[%s1704_s8 + $0xd0] sm:$0xff]  ;;  %v315_v27 = vld [vmem:[%s1704_s8 + $0xd8] sm:$0xff] }
  0x17   : > { %1407 = vmatprep.mubr.msk.f32.mxu0 %vm324_vm0, %v290_v8  ;;  %1431 = vmatprep.mubr.msk.f32.mxu1 %vm324_vm0, %v306_v9  ;;  %v300_v28 = vld [vmem:[%s1704_s8 + $0x60] sm:$0xff]  ;;  %v301_v30 = vld [vmem:[%s1704_s8 + $0x68] sm:$0xff]  ;;  %v302_v32 = vld [vmem:[%s1704_s8 + $0x70] sm:$0xff] }
  0x18   : > { %v316_v29 = vld [vmem:[%s1704_s8 + $0xe0] sm:$0xff]  ;;  %v317_v31 = vld [vmem:[%s1704_s8 + $0xe8] sm:$0xff]  ;;  %v318_v33 = vld [vmem:[%s1704_s8 + $0xf0] sm:$0xff] }
  0x19   : > { %v303_v34 = vld [vmem:[%s1704_s8 + $0x78] sm:$0xff]  ;;  %v1778_v38 = vld [vmem:[%s2228_s3] ss:$0 sm:$0xff] }
  0x1a   : > { %1408 = vmatmul.mubr.msk.f32.gmra.mxu0 %vm324_vm0, %v291_v10  ;;  %1432 = vmatmul.mubr.msk.f32.gmra.mxu1 %vm324_vm0, %v307_v11  ;;  %v319_v35 = vld [vmem:[%s1704_s8 + $0xf8] sm:$0xff] }
  0x1b   : > { %1410 = vmatprep.mubr.msk.f32.mxu0 %vm324_vm0, %v292_v12  ;;  %1434 = vmatprep.mubr.msk.f32.mxu1 %vm324_vm0, %v308_v13 }
  0x1e   : > { %1411 = vmatmul.mubr.msk.f32.gmra.mxu0 %vm324_vm0, %v293_v14  ;;  %1435 = vmatmul.mubr.msk.f32.gmra.mxu1 %vm324_vm0, %v309_v15 }
  0x1f   : > { %1413 = vmatprep.mubr.msk.f32.mxu0 %vm324_vm0, %v294_v16  ;;  %1437 = vmatprep.mubr.msk.f32.mxu1 %vm324_vm0, %v310_v17 }
  0x22   : > { %1414 = vmatmul.mubr.msk.f32.gmra.mxu0 %vm324_vm0, %v295_v18  ;;  %1438 = vmatmul.mubr.msk.f32.gmra.mxu1 %vm324_vm0, %v311_v19 }
  0x23   : > { %1416 = vmatprep.mubr.msk.f32.mxu0 %vm324_vm0, %v296_v20  ;;  %1440 = vmatprep.mubr.msk.f32.mxu1 %vm324_vm0, %v312_v21 }
  0x26   : > { %1417 = vmatmul.mubr.msk.f32.gmra.mxu0 %vm324_vm0, %v297_v22  ;;  %1441 = vmatmul.mubr.msk.f32.gmra.mxu1 %vm324_vm0, %v313_v23 }
  0x27   : > { %1419 = vmatprep.mubr.msk.f32.mxu0 %vm324_vm0, %v298_v24  ;;  %1443 = vmatprep.mubr.msk.f32.mxu1 %vm324_vm0, %v314_v25 }
  0x2a   : > { %1420 = vmatmul.mubr.msk.f32.gmra.mxu0 %vm324_vm0, %v299_v26  ;;  %1444 = vmatmul.mubr.msk.f32.gmra.mxu1 %vm324_vm0, %v315_v27 }
  0x2b   : > { %1422 = vmatprep.mubr.msk.f32.mxu0 %vm324_vm0, %v300_v28  ;;  %1446 = vmatprep.mubr.msk.f32.mxu1 %vm324_vm0, %v316_v29 }
  0x2e   : > { %1423 = vmatmul.mubr.msk.f32.gmra.mxu0 %vm324_vm0, %v301_v30  ;;  %1447 = vmatmul.mubr.msk.f32.gmra.mxu1 %vm324_vm0, %v317_v31 }
  0x2f   : > { %1425 = vmatprep.mubr.msk.f32.mxu0 %vm324_vm0, %v302_v32  ;;  %1449 = vmatprep.mubr.msk.f32.mxu1 %vm324_vm0, %v318_v33 }
  0x32   : > { %1426 = vmatmul.mubr.msk.f32.gmra.mxu0 %vm324_vm0, %v303_v34  ;;  %1450 = vmatmul.mubr.msk.f32.gmra.mxu1 %vm324_vm0, %v319_v35 }
  0xd6   : > { %v1406_v37 = vpop.f32.mrf.mxu0  ;;  %v1430_v39 = vpop.f32.mrf.mxu1 }
  0xd7   : > { %v654_v40 = vmul.f32 %v1406_v37, %v1773_v36  ;;  %v670_v41 = vmul.f32 %v1430_v39, %v1773_v36  ;;  %1047 = vrot.lane.b32.xlu1 %v1430_v39, %s1637_s13  ;;  %1015 = vrot.lane.b32.xlu0 %v1406_v37, %s1637_s13 }
  0xd8   : > { %v487_v42 = vpop.f32.mrf.mxu0  ;;  %v567_v43 = vpop.f32.mrf.mxu1 }
  0xd9   : > { %v1785_v44 = vadd.f32 %v1778_v38, %v654_v40  ;;  %v1788_v45 = vadd.f32 %v1778_v38, %v670_v41  ;;  %v653_v46 = vmul.f32 %v1773_v36, %v487_v42  ;;  %v669_v47 = vmul.f32 %v1773_v36, %v567_v43 }
  0xda   : > { %v1409_v48 = vpop.f32.mrf.mxu0  ;;  %v1433_v49 = vpop.f32.mrf.mxu1 }
  0xdb   : > { %v1324_v50 = vmul.f32 -1.442695, %v1785_v44  ;;  %v1340_v51 = vmul.f32 -1.442695, %v1788_v45  ;;  %v1795_v52 = vadd.f32 %v1778_v38, %v653_v46  ;;  %v1798_v53 = vadd.f32 %v1778_v38, %v669_v47  ;;  %1013 = vrot.lane.b32.xlu0 %v487_v42, %s1637_s13  ;;  %1019 = vrot.lane.b32.xlu1 %v1409_v48, %s1637_s13 }
  0xdc   : > { %v656_v54 = vmul.f32 %v1409_v48, %v1773_v36  ;;  %v672_v55 = vmul.f32 %v1433_v49, %v1773_v36  ;;  %v497_v56 = vpop.f32.mrf.mxu0  ;;  %v577_v57 = vpop.f32.mrf.mxu1 }
  0xdd   : > { %1485 = vpow2.f32 %v1324_v50  ;;  %v1323_v58 = vmul.f32 -1.442695, %v1795_v52  ;;  %v1339_v59 = vmul.f32 -1.442695, %v1798_v53  ;;  %v655_v60 = vmul.f32 %v1773_v36, %v497_v56 }
  0xde   : > { %1487 = vpow2.f32 %v1340_v51  ;;  %v1808_v61 = vadd.f32 %v1778_v38, %v656_v54  ;;  %v1811_v62 = vadd.f32 %v1778_v38, %v672_v55  ;;  %v671_v63 = vmul.f32 %v1773_v36, %v577_v57  ;;  %v1412_v0 = vpop.f32.mrf.mxu0  ;;  %v1436_v1 = vpop.f32.mrf.mxu1 }
  0xdf   : > { %1489 = vpow2.f32 %v1323_v58  ;;  %v1815_v2 = vadd.f32 %v1778_v38, %v655_v60  ;;  %v658_v3 = vmul.f32 %v1412_v0, %v1773_v36  ;;  %v674_v4 = vmul.f32 %v1436_v1, %v1773_v36  ;;  %1045 = vrot.lane.b32.xlu0 %v567_v43, %s1637_s13  ;;  %1051 = vrot.lane.b32.xlu1 %v1433_v49, %s1637_s13 }
  0xe0   : > { %1491 = vpow2.f32 %v1339_v59  ;;  %v1326_v5 = vmul.f32 -1.442695, %v1808_v61  ;;  %v1342_v6 = vmul.f32 -1.442695, %v1811_v62  ;;  %v1824_v7 = vadd.f32 %v1778_v38, %v671_v63  ;;  %v507_v8 = vpop.f32.mrf.mxu0  ;;  %v587_v9 = vpop.f32.mrf.mxu1 }
  0xe1   : > { %v1325_v10 = vmul.f32 -1.442695, %v1815_v2  ;;  %v1828_v11 = vadd.f32 %v1778_v38, %v658_v3  ;;  %v1831_v12 = vadd.f32 %v1778_v38, %v674_v4  ;;  %v657_v13 = vmul.f32 %v1773_v36, %v507_v8 }
  0xe2   : > { %1493 = vpow2.f32 %v1326_v5  ;;  %v1341_v14 = vmul.f32 -1.442695, %v1824_v7  ;;  %v673_v15 = vmul.f32 %v1773_v36, %v587_v9  ;;  %v1415_v16 = vpop.f32.mrf.mxu0  ;;  %v1836_v17 = vpop.f32.mrf.mxu1 }
  0xe3   : > { %1495 = vpow2.f32 %v1342_v6  ;;  %v1328_v18 = vmul.f32 -1.442695, %v1828_v11  ;;  %v1344_v19 = vmul.f32 -1.442695, %v1831_v12  ;;  %v1841_v20 = vadd.f32 %v1778_v38, %v657_v13  ;;  %1049 = vrot.lane.b32.xlu0 %v577_v57, %s1637_s13  ;;  %1017 = vrot.lane.b32.xlu1 %v497_v56, %s1637_s13 }
  0xe4   : > { %1497 = vpow2.f32 %v1325_v10  ;;  %v1846_v21 = vadd.f32 %v1778_v38, %v673_v15  ;;  %v660_v22 = vmul.f32 %v1415_v16, %v1773_v36  ;;  %v676_v23 = vmul.f32 %v1836_v17, %v1773_v36  ;;  %v517_v24 = vpop.f32.mrf.mxu0  ;;  %v1851_v25 = vpop.f32.mrf.mxu1 }
  0xe5   : > { %1499 = vpow2.f32 %v1341_v14  ;;  %v1327_v26 = vmul.f32 -1.442695, %v1841_v20  ;;  %v659_v27 = vmul.f32 %v1773_v36, %v517_v24  ;;  %v675_v28 = vmul.f32 %v1773_v36, %v1851_v25 }
  0xe6   : > { %1501 = vpow2.f32 %v1328_v18  ;;  %v1343_v29 = vmul.f32 -1.442695, %v1846_v21  ;;  %v1859_v30 = vadd.f32 %v1778_v38, %v660_v22  ;;  %v1862_v31 = vadd.f32 %v1778_v38, %v676_v23  ;;  %v1864_v32 = vpop.f32.mrf.mxu0  ;;  %v1866_v33 = vpop.f32.mrf.mxu1 }
  0xe7   : > { %1503 = vpow2.f32 %v1344_v19  ;;  %v1869_v34 = vadd.f32 %v1778_v38, %v659_v27  ;;  %1023 = vrot.lane.b32.xlu1 %v1412_v0, %s1637_s13  ;;  %1021 = vrot.lane.b32.xlu0 %v507_v8, %s1637_s13  ;;  %v1881_v42 = vadd.f32 %v1778_v38, %v675_v28  ;;  %v662_v59 = vmul.f32 %v1864_v32, %v1773_v36 }
  0xe8   : > { %1505 = vpow2.f32 %v1327_v26  ;;  %v1330_v35 = vmul.f32 -1.442695, %v1859_v30  ;;  %v1346_v37 = vmul.f32 -1.442695, %v1862_v31  ;;  %v1875_v39 = vpop.f32.mrf.mxu0  ;;  %v1877_v40 = vpop.f32.mrf.mxu1  ;;  %v678_v63 = vmul.f32 %v1866_v33, %v1773_v36 }
  0xe9   : > { %1507 = vpow2.f32 %v1343_v29  ;;  %v1329_v41 = vmul.f32 -1.442695, %v1869_v34  ;;  %v1345_v56 = vmul.f32 -1.442695, %v1881_v42  ;;  %v661_v3 = vmul.f32 %v1773_v36, %v1875_v39 }
  0xea   : > { %v1486_v43 = vpop.eup %1485  ;;  %1509 = vpow2.f32 %v1330_v35  ;;  %v1883_v46 = vpop.f32.mrf.mxu0  ;;  %v677_v8 = vmul.f32 %v1773_v36, %v1877_v40  ;;  %v1907_v14 = vadd.f32 %v1778_v38, %v662_v59  ;;  %v1912_v19 = vadd.f32 %v1778_v38, %v678_v63 }
  0xeb   : > { %v1488_v47 = vpop.eup %1487  ;;  %v821_v48 = vadd.f32 1.0, %v1486_v43  ;;  %1511 = vpow2.f32 %v1346_v37  ;;  %1055 = vrot.lane.b32.xlu1 %v1436_v1, %s1637_s13  ;;  %1053 = vrot.lane.b32.xlu0 %v587_v9, %s1637_s13  ;;  %v1887_v51 = vpop.f32.mrf.mxu1  ;;  %v664_v15 = vmul.f32 %v1883_v46, %v1773_v36  ;;  %v1921_v26 = vadd.f32 %v1778_v38, %v661_v3 }
  0xec   : > { %v1490_v49 = vpop.eup %1489  ;;  %v837_v50 = vadd.f32 1.0, %v1488_v47  ;;  %1513 = vpow2.f32 %v1329_v41  ;;  %v1890_v57 = vpop.f32.mrf.mxu0  ;;  %v680_v22 = vmul.f32 %v1887_v51, %v1773_v36  ;;  %v1926_v35 = vadd.f32 %v1778_v38, %v677_v8 }
  0xed   : > { %v1492_v54 = vpop.eup %1491  ;;  %1515 = vrcp.f32 %v821_v48  ;;  %v820_v55 = vadd.f32 1.0, %v1490_v49  ;;  %v1900_v4 = vpop.f32.mrf.mxu1  ;;  %v1332_v43 = vmul.f32 -1.442695, %v1907_v14  ;;  %v1934_v47 = vadd.f32 %v1778_v38, %v664_v15 }
  0xee   : > { %1517 = vrcp.f32 %v837_v50  ;;  %v836_v58 = vadd.f32 1.0, %v1492_v54  ;;  %v1904_v9 = vpop.f32.mrf.mxu0  ;;  %v1348_v50 = vmul.f32 -1.442695, %v1912_v19  ;;  %v1938_v54 = vadd.f32 %v1778_v38, %v680_v22 }
  0xef   : > { %v1494_v60 = vpop.eup %1493  ;;  %1519 = vrcp.f32 %v820_v55  ;;  %1027 = vrot.lane.b32.xlu1 %v1415_v16, %s1637_s13  ;;  %1025 = vrot.lane.b32.xlu0 %v517_v24, %s1637_s13  ;;  %v1923_v27 = vpop.f32.mrf.mxu1  ;;  %v679_v59 = vmul.f32 %v1773_v36, %v1900_v4  ;;  %v666_v8 = vmul.f32 %v1904_v9, %v1773_v36 }
  0xf0   : > { %v1496_v0 = vpop.eup %1495  ;;  %1521 = vrcp.f32 %v836_v58  ;;  %v823_v1 = vadd.f32 1.0, %v1494_v60  ;;  %v1930_v37 = vpop.f32.mrf.mxu0  ;;  %v1331_v58 = vmul.f32 -1.442695, %v1921_v26  ;;  %v1350_v15 = vmul.f32 -1.442695, %v1938_v54 }
  0xf1   : > { %v1498_v5 = vpop.eup %1497  ;;  %v839_v6 = vadd.f32 1.0, %v1496_v0  ;;  %1523 = vpow2.f32 %v1345_v56  ;;  %v1947_v60 = vpop.f32.mrf.mxu1 }
  0xf2   : > { %v1500_v10 = vpop.eup %1499  ;;  %1525 = vrcp.f32 %v823_v1  ;;  %v822_v13 = vadd.f32 1.0, %v1498_v5  ;;  %v1347_v1 = vmul.f32 -1.442695, %v1926_v35  ;;  %v1953_v3 = vpop.f32.mrf.mxu0 }
  0xf3   : > { %v1502_v16 = vpop.eup %1501  ;;  %1527 = vrcp.f32 %v839_v6  ;;  %v838_v18 = vadd.f32 1.0, %v1500_v10  ;;  %1059 = vrot.lane.b32.xlu1 %v1836_v17, %s1637_s13  ;;  %1057 = vrot.lane.b32.xlu0 %v1851_v25, %s1637_s13  ;;  %v663_v17 = vmul.f32 %v1773_v36, %v1890_v57  ;;  %v1334_v6 = vmul.f32 -1.442695, %v1934_v47 }
  0xf4   : > { %v1504_v23 = vpop.eup %1503  ;;  %1529 = vrcp.f32 %v822_v13  ;;  %v825_v24 = vadd.f32 1.0, %v1502_v16  ;;  %v682_v16 = vmul.f32 %v1923_v27, %v1773_v36 }
  0xf5   : > { %v1506_v28 = vpop.eup %1505  ;;  %1531 = vrcp.f32 %v838_v18  ;;  %v841_v29 = vadd.f32 1.0, %v1504_v23  ;;  %v1974_v23 = vadd.f32 %v1778_v38, %v679_v59 }
  0xf6   : > { %v1508_v25 = vpop.eup %1507  ;;  %1533 = vrcp.f32 %v825_v24  ;;  %v824_v41 = vadd.f32 1.0, %v1506_v28  ;;  %v1978_v24 = vpop.f32.mrf.mxu1 }
  0xf7   : > { %v1510_v48 = vpop.eup %1509  ;;  %1535 = vrcp.f32 %v841_v29  ;;  %v840_v49 = vadd.f32 1.0, %v1508_v25  ;;  %1031 = vrot.lane.b32.xlu1 %v1864_v32, %s1637_s13  ;;  %1029 = vrot.lane.b32.xlu0 %v1875_v39, %s1637_s13  ;;  %v1951_v32 = vadd.f32 %v1778_v38, %v663_v17  ;;  %v1986_v29 = vpop.f32.mrf.mxu0 }
  0xf8   : > { %v1512_v55 = vpop.eup %1511  ;;  %1537 = vrcp.f32 %v824_v41  ;;  %v827_v56 = vadd.f32 1.0, %v1510_v48  ;;  %v1992_v41 = vadd.f32 %v1778_v38, %v666_v8 }
  0xf9   : > { %v1514_v63 = vpop.eup %1513  ;;  %1539 = vrcp.f32 %v840_v49  ;;  %v843_v0 = vadd.f32 1.0, %v1512_v55  ;;  %v1999_v49 = vadd.f32 %v1778_v38, %v682_v16  ;;  %v684_v55 = vmul.f32 %v1978_v24, %v1773_v36 }
  0xfa   : > { %v1516_v39 = vpop.eup %1515  ;;  %1541 = vrcp.f32 %v827_v56  ;;  %v826_v5 = vadd.f32 1.0, %v1514_v63 }
  0xfb   : > { %v1518_v10 = vpop.eup %1517  ;;  %v917_v13 = vmul.f32 %v1516_v39, %v1785_v44  ;;  %1543 = vrcp.f32 %v843_v0  ;;  %1063 = vrot.lane.b32.xlu1 %v1866_v33, %s1637_s13  ;;  %1061 = vrot.lane.b32.xlu0 %v1877_v40, %s1637_s13  ;;  %v665_v44 = vmul.f32 %v1773_v36, %v1930_v37  ;;  %v1333_v40 = vmul.f32 -1.442695, %v1951_v32 }
  0xfc   : > { %v1520_v18 = vpop.eup %1519  ;;  %v933_v22 = vmul.f32 %v1518_v10, %v1788_v45  ;;  %1545 = vrcp.f32 %v826_v5  ;;  %v681_v45 = vmul.f32 %v1773_v36, %v1947_v60  ;;  %v2027_v5 = vpop.f32.mrf.mxu1  ;;  %v1352_v10 = vmul.f32 -1.442695, %v1999_v49 }
  0xfd   : > { %v1522_v28 = vpop.eup %1521  ;;  %950 = vst.msk [vmem:[%s1959_s16 + $0x8] sm:$0xff] %vm948_vm1, %v917_v13  ;;  %v916_v33 = vmul.f32 %v1520_v18, %v1795_v52  ;;  %1547 = vpow2.f32 %v1332_v43  ;;  %v668_v52 = vmul.f32 %v1953_v3, %v1773_v36  ;;  %v2011_v56 = vadd.f32 %v1778_v38, %v665_v44 }
  0xfe   : > { %v1524_v17 = vpop.eup %1523  ;;  %966 = vst.msk [vmem:[%s1959_s16 + $0x88] sm:$0xff] %vm948_vm1, %v933_v22  ;;  %v932_v25 = vmul.f32 %v1522_v28, %v1798_v53  ;;  %1549 = vpow2.f32 %v1348_v50  ;;  %v2034_v13 = vadd.f32 %v1778_v38, %v684_v55  ;;  %v683_v18 = vmul.f32 %v1773_v36, %v2027_v5 }
  0xff   : > { %v1526_v43 = vpop.eup %1525  ;;  %949 = vst.msk [vmem:[%s1959_s16] sm:$0xff] %vm948_vm1, %v916_v33  ;;  %v842_v48 = vadd.f32 1.0, %v1524_v17  ;;  %1551 = vpow2.f32 %v1331_v58  ;;  %1035 = vrot.lane.b32.xlu1 %v1883_v46, %s1637_s13  ;;  %1033 = vrot.lane.b32.xlu0 %v1890_v57, %s1637_s13  ;;  %v667_v58 = vmul.f32 %v1773_v36, %v1986_v29  ;;  %v1349_v46 = vmul.f32 -1.442695, %v1974_v23 }
 0x100   : > { %v1528_v53 = vpop.eup %1527  ;;  %965 = vst.msk [vmem:[%s1959_s16 + $0x80] sm:$0xff] %vm948_vm1, %v932_v25  ;;  %v919_v50 = vmul.f32 %v1526_v43, %v1808_v61  ;;  %1553 = vpow2.f32 %v1347_v1  ;;  %v2018_v57 = vadd.f32 %v1778_v38, %v681_v45  ;;  %v1336_v1 = vmul.f32 -1.442695, %v1992_v41 }
 0x101   : > { %v1530_v59 = vpop.eup %1529  ;;  %v935_v63 = vmul.f32 %v1528_v53, %v1811_v62  ;;  %1555 = vrcp.f32 %v842_v48  ;;  %v2025_v39 = vadd.f32 %v1778_v38, %v668_v52  ;;  %v1354_v33 = vmul.f32 -1.442695, %v2034_v13 }
 0x102   : > { %v1532_v0 = vpop.eup %1531  ;;  %952 = vst.msk [vmem:[%s1959_s16 + $0x18] sm:$0xff] %vm948_vm1, %v919_v50  ;;  %v918_v61 = vmul.f32 %v1530_v59, %v1815_v2  ;;  %1557 = vpow2.f32 %v1334_v6 }
 0x103   : > { %v1534_v62 = vpop.eup %1533  ;;  %968 = vst.msk [vmem:[%s1959_s16 + $0x98] sm:$0xff] %vm948_vm1, %v935_v63  ;;  %v934_v8 = vmul.f32 %v1532_v0, %v1824_v7  ;;  %1559 = vpow2.f32 %v1350_v15  ;;  %1067 = vrot.lane.b32.xlu1 %v1887_v51, %s1637_s13  ;;  %1065 = vrot.lane.b32.xlu0 %v1900_v4, %s1637_s13  ;;  %v1335_v7 = vmul.f32 -1.442695, %v2011_v56  ;;  %v2045_v15 = vadd.f32 %v1778_v38, %v667_v58 }
 0x104   : > { %v1536_v2 = vpop.eup %1535  ;;  %951 = vst.msk [vmem:[%s1959_s16 + $0x10] sm:$0xff] %vm948_vm1, %v918_v61  ;;  %v921_v6 = vmul.f32 %v1534_v62, %v1828_v11  ;;  %1561 = vpow2.f32 %v1333_v40  ;;  %v1351_v4 = vmul.f32 -1.442695, %v2018_v57  ;;  %v1338_v44 = vmul.f32 -1.442695, %v2025_v39 }
 0x105   : > { %v1538_v16 = vpop.eup %1537  ;;  %967 = vst.msk [vmem:[%s1959_s16 + $0x90] sm:$0xff] %vm948_vm1, %v934_v8  ;;  %v937_v51 = vmul.f32 %v1536_v2, %v1831_v12  ;;  %1563 = vpow2.f32 %v1349_v46  ;;  %v1337_v40 = vmul.f32 -1.442695, %v2045_v15 }
 0x106   : > { %v1540_v11 = vpop.eup %1539  ;;  %954 = vst.msk [vmem:[%s1959_s16 + $0x28] sm:$0xff] %vm948_vm1, %v921_v6  ;;  %v920_v22 = vmul.f32 %v1538_v16, %v1841_v20  ;;  %1565 = vpow2.f32 %v1336_v1 }
 0x107   : > { %v1542_v28 = vpop.eup %1541  ;;  %970 = vst.msk [vmem:[%s1959_s16 + $0xa8] sm:$0xff] %vm948_vm1, %v937_v51  ;;  %v936_v12 = vmul.f32 %v1540_v11, %v1846_v21  ;;  %1567 = vpow2.f32 %v1352_v10  ;;  %1039 = vrot.lane.b32.xlu1 %v1904_v9, %s1637_s13  ;;  %1037 = vrot.lane.b32.xlu0 %v1930_v37, %s1637_s13  ;;  %v2073_v9 = vadd.f32 %v1778_v38, %v683_v18 }
 0x108   : > { %v1544_v36 = vpop.eup %1543  ;;  %953 = vst.msk [vmem:[%s1959_s16 + $0x20] sm:$0xff] %vm948_vm1, %v920_v22  ;;  %v923_v20 = vmul.f32 %v1542_v28, %v1859_v30  ;;  %1569 = vpow2.f32 %v1335_v7 }
 0x109   : > { %v1546_v21 = vpop.eup %1545  ;;  %969 = vst.msk [vmem:[%s1959_s16 + $0xa0] sm:$0xff] %vm948_vm1, %v936_v12  ;;  %v939_v45 = vmul.f32 %v1544_v36, %v1862_v31  ;;  %1571 = vpow2.f32 %v1351_v4  ;;  %v1353_v43 = vmul.f32 -1.442695, %v2073_v9 }
 0x10a   : > { %v1548_v37 = vpop.eup %1547  ;;  %956 = vst.msk [vmem:[%s1959_s16 + $0x38] sm:$0xff] %vm948_vm1, %v923_v20  ;;  %v922_v17 = vmul.f32 %v1546_v21, %v1869_v34  ;;  %1573 = vpow2.f32 %v1338_v44 }
 0x10b   : > { %v1550_v30 = vpop.eup %1549  ;;  %972 = vst.msk [vmem:[%s1959_s16 + $0xb8] sm:$0xff] %vm948_vm1, %v939_v45  ;;  %v829_v25 = vadd.f32 1.0, %v1548_v37  ;;  %1575 = vpow2.f32 %v1354_v33  ;;  %1071 = vrot.lane.b32.xlu1 %v1923_v27, %s1637_s13  ;;  %1069 = vrot.lane.b32.xlu0 %v1947_v60, %s1637_s13 }
 0x10c   : > { %v1552_v31 = vpop.eup %1551  ;;  %955 = vst.msk [vmem:[%s1959_s16 + $0x30] sm:$0xff] %vm948_vm1, %v922_v17  ;;  %v845_v38 = vadd.f32 1.0, %v1550_v30  ;;  %1577 = vpow2.f32 %v1337_v40 }
 0x10d   : > { %v1554_v52 = vpop.eup %1553  ;;  %1579 = vrcp.f32 %v829_v25  ;;  %v828_v34 = vadd.f32 1.0, %v1552_v31 }
 0x10e   : > { %v1556_v48 = vpop.eup %1555  ;;  %1581 = vrcp.f32 %v845_v38  ;;  %v844_v55 = vadd.f32 1.0, %v1554_v52 }
 0x10f   : > { %v1558_v53 = vpop.eup %1557  ;;  %v938_v27 = vmul.f32 %v1556_v48, %v1881_v42  ;;  %1583 = vrcp.f32 %v828_v34  ;;  %1043 = vrot.lane.b32.xlu1 %v1953_v3, %s1637_s13  ;;  %1041 = vrot.lane.b32.xlu0 %v1986_v29, %s1637_s13 }
 0x110   : > { %v1560_v60 = vpop.eup %1559  ;;  %1585 = vrcp.f32 %v844_v55  ;;  %v831_v50 = vadd.f32 1.0, %v1558_v53 }
 0x111   : > { %v1562_v58 = vpop.eup %1561  ;;  %971 = vst.msk [vmem:[%s1959_s16 + $0xb0] sm:$0xff] %vm948_vm1, %v938_v27  ;;  %v847_v59 = vadd.f32 1.0, %v1560_v60  ;;  %1587 = vpow2.f32 %v1353_v43 }
 0x112   : > { %v1564_v63 = vpop.eup %1563  ;;  %1589 = vrcp.f32 %v831_v50  ;;  %v830_v46 = vadd.f32 1.0, %v1562_v58 }
 0x113   : > { %v1566_v0 = vpop.eup %1565  ;;  %1591 = vrcp.f32 %v847_v59  ;;  %v846_v42 = vadd.f32 1.0, %v1564_v63  ;;  %1075 = vrot.lane.b32.xlu1 %v1978_v24, %s1637_s13  ;;  %1073 = vrot.lane.b32.xlu0 %v2027_v5, %s1637_s13 }
 0x114   : > { %v1568_v3 = vpop.eup %1567  ;;  %1593 = vrcp.f32 %v830_v46  ;;  %v833_v29 = vadd.f32 1.0, %v1566_v0 }
 0x115   : > { %v1570_v61 = vpop.eup %1569  ;;  %1595 = vrcp.f32 %v846_v42  ;;  %v849_v1 = vadd.f32 1.0, %v1568_v3 }
 0x116   : > { %v1572_v62 = vpop.eup %1571  ;;  %1597 = vrcp.f32 %v833_v29  ;;  %v832_v8 = vadd.f32 1.0, %v1570_v61 }
 0x117   : > { %v1574_v10 = vpop.eup %1573  ;;  %1599 = vrcp.f32 %v849_v1  ;;  %v848_v2 = vadd.f32 1.0, %v1572_v62 }
 0x118   : > { %v1576_v6 = vpop.eup %1575  ;;  %1601 = vrcp.f32 %v832_v8  ;;  %v835_v7 = vadd.f32 1.0, %v1574_v10 }
 0x119   : > { %v1578_v24 = vpop.eup %1577  ;;  %1603 = vrcp.f32 %v848_v2  ;;  %v851_v5 = vadd.f32 1.0, %v1576_v6 }
 0x11a   : > { %v1580_v16 = vpop.eup %1579  ;;  %1605 = vrcp.f32 %v835_v7  ;;  %v834_v51 = vadd.f32 1.0, %v1578_v24 }
 0x11b   : > { %v1582_v4 = vpop.eup %1581  ;;  %v925_v18 = vmul.f32 %v1580_v16, %v1907_v14  ;;  %1607 = vrcp.f32 %v851_v5 }
 0x11c   : > { %v1584_v11 = vpop.eup %1583  ;;  %v941_v22 = vmul.f32 %v1582_v4, %v1912_v19  ;;  %1609 = vrcp.f32 %v834_v51 }
 0x11d   : > { %v1586_v44 = vpop.eup %1585  ;;  %958 = vst.msk [vmem:[%s1959_s16 + $0x48] sm:$0xff] %vm948_vm1, %v925_v18  ;;  %v924_v28 = vmul.f32 %v1584_v11, %v1921_v26 }
 0x11e   : > { %v1588_v12 = vpop.eup %1587  ;;  %974 = vst.msk [vmem:[%s1959_s16 + $0xc8] sm:$0xff] %vm948_vm1, %v941_v22  ;;  %v940_v33 = vmul.f32 %v1586_v44, %v1926_v35 }
 0x11f   : > { %v1590_v36 = vpop.eup %1589  ;;  %957 = vst.msk [vmem:[%s1959_s16 + $0x40] sm:$0xff] %vm948_vm1, %v924_v28  ;;  %v850_v14 = vadd.f32 1.0, %v1588_v12 }
 0x120   : > { %v1592_v20 = vpop.eup %1591  ;;  %973 = vst.msk [vmem:[%s1959_s16 + $0xc0] sm:$0xff] %vm948_vm1, %v940_v33  ;;  %v927_v19 = vmul.f32 %v1590_v36, %v1934_v47 }
 0x121   : > { %v1594_v40 = vpop.eup %1593  ;;  %v943_v26 = vmul.f32 %v1592_v20, %v1938_v54  ;;  %1611 = vrcp.f32 %v850_v14 }
 0x122   : > { %v1596_v21 = vpop.eup %1595  ;;  %960 = vst.msk [vmem:[%s1959_s16 + $0x58] sm:$0xff] %vm948_vm1, %v927_v19  ;;  %v926_v35 = vmul.f32 %v1594_v40, %v1951_v32 }
 0x123   : > { %v1598_v45 = vpop.eup %1597  ;;  %976 = vst.msk [vmem:[%s1959_s16 + $0xd8] sm:$0xff] %vm948_vm1, %v943_v26  ;;  %v942_v37 = vmul.f32 %v1596_v21, %v1974_v23 }
 0x124   : > { %v1600_v17 = vpop.eup %1599  ;;  %959 = vst.msk [vmem:[%s1959_s16 + $0x50] sm:$0xff] %vm948_vm1, %v926_v35  ;;  %v929_v47 = vmul.f32 %v1598_v45, %v1992_v41 }
 0x125   : > { %v1602_v54 = vpop.eup %1601  ;;  %975 = vst.msk [vmem:[%s1959_s16 + $0xd0] sm:$0xff] %vm948_vm1, %v942_v37  ;;  %v945_v30 = vmul.f32 %v1600_v17, %v1999_v49 }
 0x126   : > { %v1604_v32 = vpop.eup %1603  ;;  %962 = vst.msk [vmem:[%s1959_s16 + $0x68] sm:$0xff] %vm948_vm1, %v929_v47  ;;  %v928_v25 = vmul.f32 %v1602_v54, %v2011_v56 }
 0x127   : > { %v1606_v23 = vpop.eup %1605  ;;  %978 = vst.msk [vmem:[%s1959_s16 + $0xe8] sm:$0xff] %vm948_vm1, %v945_v30  ;;  %v944_v41 = vmul.f32 %v1604_v32, %v2018_v57 }
 0x128   : > { %v1608_v31 = vpop.eup %1607  ;;  %961 = vst.msk [vmem:[%s1959_s16 + $0x60] sm:$0xff] %vm948_vm1, %v928_v25  ;;  %v931_v38 = vmul.f32 %v1606_v23, %v2025_v39 }
 0x129   : > { %v1610_v52 = vpop.eup %1609  ;;  %977 = vst.msk [vmem:[%s1959_s16 + $0xe0] sm:$0xff] %vm948_vm1, %v944_v41  ;;  %v947_v49 = vmul.f32 %v1608_v31, %v2034_v13 }
 0x12a   : > { %964 = vst.msk [vmem:[%s1959_s16 + $0x78] sm:$0xff] %vm948_vm1, %v931_v38  ;;  %v930_v56 = vmul.f32 %v1610_v52, %v2045_v15 }
 0x12b   : > { %980 = vst.msk [vmem:[%s1959_s16 + $0xf8] sm:$0xff] %vm948_vm1, %v947_v49 }
 0x12c   : > { %963 = vst.msk [vmem:[%s1959_s16 + $0x70] sm:$0xff] %vm948_vm1, %v930_v56 }
 0x12e   : > { %v1612_v34 = vpop.eup %1611 }
 0x12f   : > { %v946_v57 = vmul.f32 %v1612_v34, %v2073_v9 }
 0x131   : > { %979 = vst.msk [vmem:[%s1959_s16 + $0xf0] sm:$0xff] %vm948_vm1, %v946_v57 }
 0x149   : > { %v1048_v39 = vpop.permute.xlu1 %1047  ;;  %v1016_v13 = vpop.permute.xlu0 %1015 }
 0x14a   : > { %1126 = vst.msk [vmem:[%s2150_s22 + $0x88] sm:$0xff] %vm948_vm1, %v1048_v39  ;;  %1110 = vst.msk [vmem:[%s2150_s22 + $0x8] sm:$0xff] %vm948_vm1, %v1016_v13 }
 0x14d   : > { %v1014_v15 = vpop.permute.xlu0 %1013  ;;  %v1020_v9 = vpop.permute.xlu1 %1019 }
 0x14e   : > { %1109 = vst.msk [vmem:[%s2150_s22] sm:$0xff] %vm948_vm1, %v1014_v15  ;;  %1112 = vst.msk [vmem:[%s2150_s22 + $0x18] sm:$0xff] %vm948_vm1, %v1020_v9 }
 0x151   : > { %v1046_v43 = vpop.permute.xlu0 %1045  ;;  %v1052_v48 = vpop.permute.xlu1 %1051 }
 0x152   : > { %1125 = vst.msk [vmem:[%s2150_s22 + $0x80] sm:$0xff] %vm948_vm1, %v1046_v43  ;;  %1128 = vst.msk [vmem:[%s2150_s22 + $0x98] sm:$0xff] %vm948_vm1, %v1052_v48 }
 0x155   : > { %v1050_v55 = vpop.permute.xlu0 %1049  ;;  %v1018_v53 = vpop.permute.xlu1 %1017 }
 0x156   : > { %1127 = vst.msk [vmem:[%s2150_s22 + $0x90] sm:$0xff] %vm948_vm1, %v1050_v55  ;;  %1111 = vst.msk [vmem:[%s2150_s22 + $0x10] sm:$0xff] %vm948_vm1, %v1018_v53 }
 0x159   : > { %v1024_v27 = vpop.permute.xlu1 %1023  ;;  %v1022_v60 = vpop.permute.xlu0 %1021 }
 0x15a   : > { %1114 = vst.msk [vmem:[%s2150_s22 + $0x28] sm:$0xff] %vm948_vm1, %v1024_v27  ;;  %1113 = vst.msk [vmem:[%s2150_s22 + $0x20] sm:$0xff] %vm948_vm1, %v1022_v60 }
 0x15d   : > { %v1056_v50 = vpop.permute.xlu1 %1055  ;;  %v1054_v58 = vpop.permute.xlu0 %1053 }
 0x15e   : > { %1130 = vst.msk [vmem:[%s2150_s22 + $0xa8] sm:$0xff] %vm948_vm1, %v1056_v50  ;;  %1129 = vst.msk [vmem:[%s2150_s22 + $0xa0] sm:$0xff] %vm948_vm1, %v1054_v58 }
 0x161   : > { %v1028_v59 = vpop.permute.xlu1 %1027  ;;  %v1026_v63 = vpop.permute.xlu0 %1025 }
 0x162   : > { %1116 = vst.msk [vmem:[%s2150_s22 + $0x38] sm:$0xff] %vm948_vm1, %v1028_v59  ;;  %1115 = vst.msk [vmem:[%s2150_s22 + $0x30] sm:$0xff] %vm948_vm1, %v1026_v63 }
 0x165   : > { %v1060_v46 = vpop.permute.xlu1 %1059  ;;  %v1058_v0 = vpop.permute.xlu0 %1057 }
 0x166   : > { %1132 = vst.msk [vmem:[%s2150_s22 + $0xb8] sm:$0xff] %vm948_vm1, %v1060_v46  ;;  %1131 = vst.msk [vmem:[%s2150_s22 + $0xb0] sm:$0xff] %vm948_vm1, %v1058_v0 }
 0x169   : > { %v1032_v42 = vpop.permute.xlu1 %1031  ;;  %v1030_v3 = vpop.permute.xlu0 %1029 }
 0x16a   : > { %1118 = vst.msk [vmem:[%s2150_s22 + $0x48] sm:$0xff] %vm948_vm1, %v1032_v42  ;;  %1117 = vst.msk [vmem:[%s2150_s22 + $0x40] sm:$0xff] %vm948_vm1, %v1030_v3 }
 0x16d   : > { %v1064_v29 = vpop.permute.xlu1 %1063  ;;  %v1062_v61 = vpop.permute.xlu0 %1061 }
 0x16e   : > { %1134 = vst.msk [vmem:[%s2150_s22 + $0xc8] sm:$0xff] %vm948_vm1, %v1064_v29  ;;  %1133 = vst.msk [vmem:[%s2150_s22 + $0xc0] sm:$0xff] %vm948_vm1, %v1062_v61 }
 0x171   : > { %v1036_v1 = vpop.permute.xlu1 %1035  ;;  %v1034_v62 = vpop.permute.xlu0 %1033 }
 0x172   : > { %1120 = vst.msk [vmem:[%s2150_s22 + $0x58] sm:$0xff] %vm948_vm1, %v1036_v1  ;;  %1119 = vst.msk [vmem:[%s2150_s22 + $0x50] sm:$0xff] %vm948_vm1, %v1034_v62 }
 0x175   : > { %v1068_v8 = vpop.permute.xlu1 %1067  ;;  %v1066_v10 = vpop.permute.xlu0 %1065 }
 0x176   : > { %1136 = vst.msk [vmem:[%s2150_s22 + $0xd8] sm:$0xff] %vm948_vm1, %v1068_v8  ;;  %1135 = vst.msk [vmem:[%s2150_s22 + $0xd0] sm:$0xff] %vm948_vm1, %v1066_v10 }
 0x179   : > { %v1040_v2 = vpop.permute.xlu1 %1039  ;;  %v1038_v6 = vpop.permute.xlu0 %1037 }
 0x17a   : > { %1122 = vst.msk [vmem:[%s2150_s22 + $0x68] sm:$0xff] %vm948_vm1, %v1040_v2  ;;  %1121 = vst.msk [vmem:[%s2150_s22 + $0x60] sm:$0xff] %vm948_vm1, %v1038_v6 }
 0x17d   : > { %v1072_v7 = vpop.permute.xlu1 %1071  ;;  %v1070_v24 = vpop.permute.xlu0 %1069 }
 0x17e   : > { %1138 = vst.msk [vmem:[%s2150_s22 + $0xe8] sm:$0xff] %vm948_vm1, %v1072_v7  ;;  %1137 = vst.msk [vmem:[%s2150_s22 + $0xe0] sm:$0xff] %vm948_vm1, %v1070_v24 }
 0x181   : > { %v1044_v5 = vpop.permute.xlu1 %1043  ;;  %v1042_v16 = vpop.permute.xlu0 %1041 }
 0x182   : > { %1124 = vst.msk [vmem:[%s2150_s22 + $0x78] sm:$0xff] %vm948_vm1, %v1044_v5  ;;  %1123 = vst.msk [vmem:[%s2150_s22 + $0x70] sm:$0xff] %vm948_vm1, %v1042_v16 }
 0x185   : > { %v1076_v51 = vpop.permute.xlu1 %1075  ;;  %v1074_v4 = vpop.permute.xlu0 %1073 }
 0x186   : > { %1140 = vst.msk [vmem:[%s2150_s22 + $0xf8] sm:$0xff] %vm948_vm1, %v1076_v51  ;;  %1139 = vst.msk [vmem:[%s2150_s22 + $0xf0] sm:$0xff] %vm948_vm1, %v1074_v4 }
 0x187 PF: > { %s16_s20 = sadd.s32 1, %s1635_s20   ;;  %s2231_s18 = smov %s1631_s19 }
 0x188   : > { %p13_p5 = scmp.ge.s32.totalorder %s16_s20, 4   ;;  %s2232_s19 = smov %s2234_s21 }
 0x18a   :  { %15 = sbr.rel (!%p13_p5) target bundleno = 2 (0x2), region = 78 }

</bundles_post_ra>
